<compile_context>
chip_gen: v6e
topology: v6e:2x2x1
jax: 0.10.0
libtpu: 0.0.40
codegen_flags: <defaults>
</compile_context>

<pallas_src>
import math

import jax
import jax.numpy as jnp
from jax import lax
from jax.experimental import pallas as pl
from jax.experimental.pallas import tpu as pltpu


def _round_up(x: int, m: int) -> int:
    return ((x + m - 1) // m) * m


def _linear_kernel(x_ref, w_ref, o_ref, acc_ref):
    # x_ref: (tm, tk)   w_ref: (tn, tk)   o_ref: (tm, tn)   acc_ref: (tm, tn) f32
    k = pl.program_id(2)

    @pl.when(k == 0)
    def _():
        acc_ref[...] = jnp.zeros_like(acc_ref)

    # NT matmul: contract the last (K) dim of both operands -> (tm, tn) on the MXU.
    acc_ref[...] += lax.dot_general(
        x_ref[...],
        w_ref[...],
        dimension_numbers=(((1,), (1,)), ((), ())),
        preferred_element_type=jnp.float32,
    )

    @pl.when(k == pl.num_programs(2) - 1)
    def _():
        o_ref[...] = acc_ref[...].astype(o_ref.dtype)


def _pick_tiles(m: int, k: int, n: int, x_dtype, w_dtype):
    # 512x512 output tiles: ~4x the arithmetic intensity of 256 tiles while the
    # double-buffered footprint still fits every generation's default scoped VMEM.
    # If a dim is smaller than the tile, use the full dim (always layout-legal,
    # regardless of dtype packing, and yields a single-block fast path).
    tm = 512 if m >= 512 else m
    tn = 512 if n >= 512 else n
    narrow = (jnp.dtype(x_dtype).itemsize <= 2) and (jnp.dtype(w_dtype).itemsize <= 2)
    tk_target = 1024 if narrow else 512  # bigger K tile halves acc RMW traffic per MAC
    tk = tk_target if k >= tk_target else _round_up(k, 128)
    return tm, tn, tk


def linear_forward(x: jax.Array, w: jax.Array) -> jax.Array:
    """y = x @ W.T with a tiled Pallas TPU kernel.

    x: (..., in_features)
    w: (out_features, in_features)   -- kept in its natural (N, K) layout
    returns: (..., out_features), dtype = promote_types(x.dtype, w.dtype)
    """
    *lead, in_features = x.shape
    out_features, in_features_w = w.shape
    assert in_features == in_features_w

    m = math.prod(lead) if lead else 1
    k = in_features
    n = out_features

    out_dtype = jnp.promote_types(x.dtype, w.dtype)

    x2d = x.reshape(m, k)

    tm, tn, tk = _pick_tiles(m, k, n, x.dtype, w.dtype)

    # Only K must be zero-padded (garbage along the reduction axis would corrupt the
    # result).  Partial M/N edge blocks are handled by Pallas masking.
    k_pad = _round_up(k, tk)
    if k_pad != k:
        x2d = jnp.pad(x2d, ((0, 0), (0, k_pad - k)))
        w2d = jnp.pad(w, ((0, 0), (0, k_pad - k)))
    else:
        w2d = w

    grid_m = pl.cdiv(m, tm)
    grid_n = pl.cdiv(n, tn)
    grid = (grid_m, grid_n, k_pad // tk)

    x_item = jnp.dtype(x.dtype).itemsize
    w_item = jnp.dtype(w.dtype).itemsize
    o_item = jnp.dtype(out_dtype).itemsize
    # True streamed bytes: x is re-read once per output-tile column, W once per
    # output-tile row, plus one output write.
    cost = pl.CostEstimate(
        flops=2 * m * n * k_pad,
        transcendentals=0,
        bytes_accessed=(
            m * k_pad * x_item * grid_n
            + n * k_pad * w_item * grid_m
            + m * n * o_item
        ),
    )

    out2d = pl.pallas_call(
        _linear_kernel,
        out_shape=jax.ShapeDtypeStruct((m, n), out_dtype),
        grid_spec=pltpu.PrefetchScalarGridSpec(
            num_scalar_prefetch=0,
            grid=grid,
            in_specs=[
                pl.BlockSpec((tm, tk), lambda i, j, kk: (i, kk)),   # x: (M, K)
                pl.BlockSpec((tn, tk), lambda i, j, kk: (j, kk)),   # w: (N, K), no transpose
            ],
            out_specs=pl.BlockSpec((tm, tn), lambda i, j, kk: (i, j)),
            scratch_shapes=[pltpu.VMEM((tm, tn), jnp.float32)],
        ),
        compiler_params=pltpu.CompilerParams(
            dimension_semantics=("parallel", "parallel", "arbitrary"),
        ),
        cost_estimate=cost,
    )(x2d, w2d)

    return out2d.reshape(*lead, n)


def init_linear_weight(key, in_features: int, out_features: int, dtype=jnp.float32):
    """Truncated-normal init matching the PyTorch module:
    std = sqrt(2/(in+out)), truncated at +/- 3*std."""
    sigma = math.sqrt(2.0 / (in_features + out_features))
    w = jax.random.truncated_normal(
        key, lower=-3.0, upper=3.0, shape=(out_features, in_features), dtype=jnp.float32
    ) * sigma
    return w.astype(dtype)


if __name__ == "__main__":
    key = jax.random.PRNGKey(0)
    k_w, k_x = jax.random.split(key)

    batch, seq, in_features, out_features = 2, 8, 32, 64
    w = init_linear_weight(k_w, in_features, out_features, dtype=jnp.float32)
    x = jax.random.normal(k_x, (batch, seq, in_features), dtype=jnp.float32)

    y = linear_forward(x, w)
    y = jax.block_until_ready(y)

    # sanity check against plain JAX reference
    y_ref = jnp.einsum("...i,ji->...j", x, w)
    assert y.shape == (batch, seq, out_features)
    assert jnp.allclose(y, y_ref, atol=1e-4, rtol=1e-4)

    print("KERNEL_OK")
</pallas_src>

<mosaic_0001>
module attributes {stable_mosaic.version = 11 : i64} {
  func.func @_linear_kernel(%arg0: i32, %arg1: i32, %arg2: i32, %arg3: memref<16x128xf32, #tpu.memory_space<vmem>>, %arg4: memref<64x128xf32, #tpu.memory_space<vmem>>, %arg5: memref<16x64xf32, #tpu.memory_space<vmem>>, %arg6: memref<16x64xf32, #tpu.memory_space<vmem>>) attributes {dimension_semantics = [#tpu.dimension_semantics<parallel>, #tpu.dimension_semantics<parallel>, #tpu.dimension_semantics<arbitrary>], iteration_bounds = array<i64: 1, 1, 1>, scalar_prefetch = 0 : i64, scratch_operands = 1 : i64, tpu.core_type = #tpu.core_type<tc>, window_params = [{transform_indices = @transform_0, window_bounds = array<i64: 16, 128>}, {transform_indices = @transform_1, window_bounds = array<i64: 64, 128>}, {transform_indices = @transform_2, window_bounds = array<i64: 16, 64>}]} {
    %c0_i32 = arith.constant 0 : i32
    %0 = arith.cmpi eq, %arg2, %c0_i32 : i32
    %1 = arith.extui %0 : i1 to i32
    %c0_i32_0 = arith.constant 0 : i32
    %2 = arith.cmpi ne, %1, %c0_i32_0 : i32
    scf.if %2 {
      %cst_10 = arith.constant 0.000000e+00 : f32
      %12 = vector.broadcast %cst_10 : f32 to vector<16x64xf32>
      %c0_11 = arith.constant 0 : index
      %c0_12 = arith.constant 0 : index
      %13 = vector.load %arg6[%c0_11, %c0_12] : memref<16x64xf32, #tpu.memory_space<vmem>>, vector<16x64xf32>
      tpu.vector_store %arg6[%c0_11, %c0_12], %12 {strides = array<i32>} : memref<16x64xf32, #tpu.memory_space<vmem>>, vector<16x64xf32>,
    } else {
    }
    %c0 = arith.constant 0 : index
    %c0_1 = arith.constant 0 : index
    %3 = vector.load %arg6[%c0, %c0_1] : memref<16x64xf32, #tpu.memory_space<vmem>>, vector<16x64xf32>
    %c0_2 = arith.constant 0 : index
    %c0_3 = arith.constant 0 : index
    %4 = vector.load %arg3[%c0_2, %c0_3] : memref<16x128xf32, #tpu.memory_space<vmem>>, vector<16x128xf32>
    %c0_4 = arith.constant 0 : index
    %c0_5 = arith.constant 0 : index
    %5 = vector.load %arg4[%c0_4, %c0_5] : memref<64x128xf32, #tpu.memory_space<vmem>>, vector<64x128xf32>
    %cst = arith.constant dense<0.000000e+00> : vector<16x64xf32>
    %6 = tpu.matmul %4, %5, %cst {dimension_numbers = #tpu.dot_dimension_numbers<[1], [1], [0], [0], [0, 0, 1, 0], [], []>} : vector<16x128xf32>, vector<64x128xf32>, vector<16x64xf32> -> vector<16x64xf32>
    %7 = arith.addf %3, %6 : vector<16x64xf32>
    %c0_6 = arith.constant 0 : index
    %c0_7 = arith.constant 0 : index
    %8 = vector.load %arg6[%c0_6, %c0_7] : memref<16x64xf32, #tpu.memory_space<vmem>>, vector<16x64xf32>
    tpu.vector_store %arg6[%c0_6, %c0_7], %7 {strides = array<i32>} : memref<16x64xf32, #tpu.memory_space<vmem>>, vector<16x64xf32>,
    %c0_i32_8 = arith.constant 0 : i32
    %9 = arith.cmpi eq, %arg2, %c0_i32_8 : i32
    %10 = arith.extui %9 : i1 to i32
    %c0_i32_9 = arith.constant 0 : i32
    %11 = arith.cmpi ne, %10, %c0_i32_9 : i32
    scf.if %11 {
      %c0_10 = arith.constant 0 : index
      %c0_11 = arith.constant 0 : index
      %12 = vector.load %arg6[%c0_10, %c0_11] : memref<16x64xf32, #tpu.memory_space<vmem>>, vector<16x64xf32>
      %c0_12 = arith.constant 0 : index
      %c0_13 = arith.constant 0 : index
      %13 = vector.load %arg5[%c0_12, %c0_13] : memref<16x64xf32, #tpu.memory_space<vmem>>, vector<16x64xf32>
      tpu.vector_store %arg5[%c0_12, %c0_13], %12 {strides = array<i32>} : memref<16x64xf32, #tpu.memory_space<vmem>>, vector<16x64xf32>,
    } else {
    }
    return
  }
  func.func @transform_0(%arg0: i32, %arg1: i32, %arg2: i32) -> (i32, i32) {
    %c0_i32 = arith.constant 0 : i32
    return %arg0, %arg2 : i32, i32
  }
  func.func @transform_1(%arg0: i32, %arg1: i32, %arg2: i32) -> (i32, i32) {
    %c0_i32 = arith.constant 0 : i32
    return %arg1, %arg2 : i32, i32
  }
  func.func @transform_2(%arg0: i32, %arg1: i32, %arg2: i32) -> (i32, i32) {
    %c0_i32 = arith.constant 0 : i32
    return %arg0, %arg1 : i32, i32
  }
}

</mosaic_0001>

<bundles_post_ra>
// kernel: tpu_custom_call.1
= control target key start
LH: loop header
LB: loop body
LE: loop exit
PB: predicated region body
PF: predicated region fallthrough
CT: control target
= control target key end

     0   :  { %7 = vsyncpa [#allocation4], 0  ;;  %s310_s0 = inlined_call_operand.hbm [shape: f32[16,128], index: 0, kind: input, shape index: {}]   ;;  %s311_s1 = inlined_call_operand.hbm [shape: f32[64,128], index: 1, kind: input, shape index: {}]   ;;  %s312_s2 = inlined_call_operand.hbm [shape: f32[16,64], index: 2, kind: output, shape index: {}]  }
   0x1   :  { %8 = vsyncpa [#allocation7], 0 }
   0x2   :  { %9 = vsyncpa [#allocation5], 0  ;;  %s265_s9 = smov [#allocation3]  }
   0x3   :  { %s15_s10 = sshll.u32 %s265_s9, 4  ;;  %s16_s10 = int_to_ptr.vmem [resolvable:$true] %s15_s10 }
   0x4   :  { %s207_s11 = scalar_lea.vmem %s16_s10, 256  ;;  %p212_p1 = scmp.lt.s32.totalorder %s16_s10, %s16_s10 }
   0x5   :  { %p208_p0 = scmp.ne.s32.totalorder %s16_s10, %s207_s11  ;;  %p213_p2 = scmp.lt.s32.totalorder %s207_s11, %s207_s11 }
   0x7   :  { %p214_p3 = por %p213_p2, %p212_p1 }
   0x9   :  { %p215_p4 = pnand %p214_p3, %p208_p0 }
   0xb   :  { %218 = shalt.err (!%p215_p4)
}
   0xc   :  { %s266_s12 = smov 128   ;;  %s267_s13 = smov 8  }
   0xd   :  { %21 = dma.hbm_to_vmem [thread:$0]  %s310_s0, 256, %s16_s10, [#allocation4], %s266_s12, %s266_s12, %s267_s13  }
   0xe   :  { %s268_s16 = smov [#allocation6]  }
   0xf   :  { %s27_s17 = sshll.u32 %s268_s16, 4  ;;  %s28_s17 = int_to_ptr.vmem [resolvable:$true] %s27_s17 }
  0x10   :  { %s227_s18 = scalar_lea.vmem %s28_s17, 1024  ;;  %p232_p6 = scmp.lt.s32.totalorder %s28_s17, %s28_s17 }
  0x11   :  { %p228_p5 = scmp.ne.s32.totalorder %s28_s17, %s227_s18  ;;  %p233_p7 = scmp.lt.s32.totalorder %s227_s18, %s227_s18 }
  0x13   :  { %p234_p8 = por %p233_p7, %p232_p6 }
  0x15   :  { %p235_p9 = pnand %p234_p8, %p228_p5 }
  0x17   :  { %238 = shalt.err (!%p235_p9)
}
  0x18   :  { %33 = dma.hbm_to_vmem [thread:$0]  %s311_s1, 1024, %s28_s17, [#allocation7], %s266_s12, %s266_s12, %s267_s13  }
  0x19   :  { %259 = dma.done.wait [#allocation4], 256  }
  0x1a   :  { %260 = vsyncadd [#allocation4], 4294967040 }
  0x1b   :  { %261 = dma.done.wait [#allocation7], 1024  }
  0x1c   :  { %262 = vsyncadd [#allocation7], 4294966272  ;;  %vm44_vm0 = vcmask 523264   ;;  %v269_v0 = vmov 0.0   ;;  %v58_v1 = vld [vmem:[#allocation6 + $0x38] sm:$0xff]  ;;  %v57_v2 = vld [vmem:[#allocation6 + $0x30] sm:$0xff] }
  0x1d   :  { %46 = vst.msk [vmem:[#allocation2 + $0x8] sm:$0xff] %vm44_vm0, %v269_v0  ;;  %45 = vst.msk [vmem:[#allocation2] sm:$0xff] %vm44_vm0, %v269_v0  ;;  %174 = vmatprep.subr.mxu0 %v58_v1  ;;  %v49_v3 = vld [vmem:[#allocation3] sm:$0xff]  ;;  %v56_v4 = vld [vmem:[#allocation6 + $0x28] sm:$0xff]  ;;  %s270_s0 = smov [#allocation8]  }
  0x1e   :  { %175 = vmatpush3.xpose.msra.mxu0 %v58_v1  ;;  %190 = vmatprep.mubr.f32.mxu0 %v49_v3  ;;  %v55_v5 = vld [vmem:[#allocation6 + $0x20] sm:$0xff]  ;;  %v54_v6 = vld [vmem:[#allocation6 + $0x18] sm:$0xff]  ;;  %v53_v7 = vld [vmem:[#allocation6 + $0x10] sm:$0xff]  ;;  %s151_s1 = sshll.u32 %s270_s0, 4  ;;  %s152_s1 = int_to_ptr.vmem [resolvable:$true] %s151_s1 }
  0x1f   :  { %176 = vmatprep.subr.mxu0 %v57_v2  ;;  %v52_v8 = vld [vmem:[#allocation6 + $0x8] sm:$0xff]  ;;  %v51_v9 = vld [vmem:[#allocation6] sm:$0xff]  ;;  %v50_v10 = vld [vmem:[#allocation3 + $0x8] sm:$0xff]  ;;  %s239_s21 = scalar_lea.vmem %s152_s1, 256  ;;  %p244_p11 = scmp.lt.s32.totalorder %s152_s1, %s152_s1 }
  0x20   :  { %p240_p10 = scmp.ne.s32.totalorder %s152_s1, %s239_s21  ;;  %p245_p12 = scmp.lt.s32.totalorder %s239_s21, %s239_s21 }
  0x22   :  { %177 = vmatpush3.xpose.msra.mxu0 %v57_v2  ;;  %p246_p13 = por %p245_p12, %p244_p11 }
  0x23   :  { %178 = vmatprep.subr.mxu0 %v56_v4 }
  0x24   :  { %v48_v11 = vld [vmem:[#allocation2 + $0x8] sm:$0xff]  ;;  %v47_v13 = vld [vmem:[#allocation2] sm:$0xff]  ;;  %p247_p0 = pnand %p246_p13, %p240_p10 }
  0x26   :  { %179 = vmatpush3.xpose.msra.mxu0 %v56_v4 }
  0x27   :  { %180 = vmatprep.subr.mxu0 %v55_v5 }
  0x2a   :  { %181 = vmatpush3.xpose.msra.mxu0 %v55_v5 }
  0x2b   :  { %182 = vmatprep.subr.mxu0 %v54_v6 }
  0x2e   :  { %183 = vmatpush3.xpose.msra.mxu0 %v54_v6 }
  0x2f   :  { %184 = vmatprep.subr.mxu0 %v53_v7 }
  0x32   :  { %185 = vmatpush3.xpose.msra.mxu0 %v53_v7 }
  0x33   :  { %186 = vmatprep.subr.mxu0 %v52_v8 }
  0x36   :  { %187 = vmatpush3.xpose.msra.mxu0 %v52_v8 }
  0x37   :  { %188 = vmatprep.subr.mxu0 %v51_v9 }
  0x3a   :  { %189 = vmatpush3.xpose.msra.mxu0 %v51_v9 }
  0x3d   :  { %191 = vmatmul.mubr.f32.vlgmr.msra.gmra.mxu0 %v50_v10 }
  0xfd   :  { %v192_v12 = vpop.f32.mrf.mxu0 }
  0xfe   :  { %v135_v14 = vadd.f32 %v192_v12, %v48_v11 }
  0xff   :  { %v125_v15 = vpop.f32.mrf.mxu0 }
 0x100   :  { %138 = vst.msk [vmem:[#allocation2 + $0x8] sm:$0xff] %vm44_vm0, %v135_v14  ;;  %v134_v16 = vadd.f32 %v125_v15, %v47_v13 }
 0x102   :  { %137 = vst.msk [vmem:[#allocation2] sm:$0xff] %vm44_vm0, %v134_v16 }
 0x107   :  { %v143_v17 = vld [vmem:[#allocation2 + $0x8] sm:$0xff] }
 0x108   :  { %145 = vst.msk [vmem:[#allocation8 + $0x8] sm:$0xff] %vm44_vm0, %v143_v17 }
 0x109   :  { %v142_v18 = vld [vmem:[#allocation2] sm:$0xff] }
 0x10a   :  { %144 = vst.msk [vmem:[#allocation8] sm:$0xff] %vm44_vm0, %v142_v18 }
 0x10b   :  { %250 = shalt.err (!%p247_p0)
}
 0x10c   :  { %157 = dma.vmem_to_hbm [thread:$0]  %s152_s1, 256, %s312_s2, [#allocation5], %s266_s12, %s266_s12, %s267_s13  }
 0x10d   :  { %263 = dma.done.wait [#allocation5], 256  }
 0x10e   :  { %264 = vsyncadd [#allocation5], 4294967040 }
 0x10f   :  { %161 = vsyncpa [#allocation4], 1 }
 0x110   :  { %162 = vsyncpa [#allocation7], 1 }
 0x111   :  { %163 = vsyncpa [#allocation5], 1 }

</bundles_post_ra>
